<compile_context>
chip_gen: v7x
topology: tpu7x:2x2x1
jax: 0.10.0
libtpu: 0.0.40
codegen_flags: <defaults>
</compile_context>

<pallas_src>
import functools

import jax
import jax.numpy as jnp
import numpy as np
from jax.experimental import pallas as pl
from jax.experimental.pallas import tpu as pltpu


# ----------------------------------------------------------------------------
# Kernel
# ----------------------------------------------------------------------------
def mlp_kernel(x_ref, w1_ref, s1_ref, t1_ref, w2_ref, s2_ref, t2_ref,
               w3_ref, b3_ref, o_ref):
    # x arrives unpadded in the feature dim as f32; cast to bf16 in-register
    # for the MXU (avoids a wrapper-side pad + cast pass over x).
    x = x_ref[...].astype(w1_ref.dtype)

    # Layer 1: Linear -> BN(eval) -> ReLU.  BN scale/shift applied in f32.
    h1 = jnp.dot(x, w1_ref[...], preferred_element_type=jnp.float32)
    h1 = jnp.maximum(h1 * s1_ref[...] + t1_ref[...], 0.0)
    # Dropout1: identity in eval mode.

    # Layer 2: Linear -> BN(eval) -> ReLU.
    h2 = jnp.dot(h1.astype(w2_ref.dtype), w2_ref[...],
                 preferred_element_type=jnp.float32)
    h2 = jnp.maximum(h2 * s2_ref[...] + t2_ref[...], 0.0)
    # Dropout2: identity in eval mode.

    # Layer 3: logits (padded lane-dense columns are zero); f32 accumulate,
    # bf16 store halves the output HBM writeback.
    logits = jnp.dot(h2.astype(w3_ref.dtype), w3_ref[...],
                     preferred_element_type=jnp.float32) + b3_ref[...]
    o_ref[...] = logits.astype(o_ref.dtype)


# ----------------------------------------------------------------------------
# One-time parameter preparation (hoisted out of the per-call path)
# ----------------------------------------------------------------------------
def _round_up(n, m):
    return ((n + m - 1) // m) * m


def _pad2d(a, rows, cols):
    return jnp.pad(a, ((0, rows - a.shape[0]), (0, cols - a.shape[1])))


def prepare_params(params, eps=1e-5, compute_dtype=jnp.bfloat16):
    """Fold Linear bias + BN(eval) into (scale, shift), pad, cast. Run once."""
    n_features, n_hidden1 = params["w1"].shape
    n_hidden2 = params["w2"].shape[1]
    n_labels = params["w3"].shape[1]

    # NOTE: 128-multiples are optimal for v5e; if real hidden sizes grow,
    # round to 256 to fill the v6e/v7x 256x256 MXU.
    H1p = _round_up(n_hidden1, 128)
    H2p = _round_up(n_hidden2, 128)
    Lp = _round_up(n_labels, 128)          # lane-dense logits -> unmasked vst

    def bn_fold(bias, gamma, beta, rm, rv):
        scale = gamma / jnp.sqrt(rv + eps)
        shift = (bias - rm) * scale + beta
        return scale, shift

    s1, t1 = bn_fold(params["b1"], params["g1"], params["beta1"],
                     params["rm1"], params["rv1"])
    s2, t2 = bn_fold(params["b2"], params["g2"], params["beta2"],
                     params["rm2"], params["rv2"])

    def row(v, n):  # f32 [1, n] broadcast row
        return jnp.pad(v, (0, n - v.shape[0]))[None, :].astype(jnp.float32)

    prep = dict(
        w1=_pad2d(params["w1"], n_features, H1p).astype(compute_dtype),
        s1=row(s1, H1p), t1=row(t1, H1p),
        w2=_pad2d(params["w2"], H1p, H2p).astype(compute_dtype),
        s2=row(s2, H2p), t2=row(t2, H2p),
        w3=_pad2d(params["w3"], H2p, Lp).astype(compute_dtype),
        b3=row(params["b3"], Lp),
    )
    return prep, n_labels


# ----------------------------------------------------------------------------
# Forward (jit this; only x-row padding + pallas_call + fused slice remain)
# ----------------------------------------------------------------------------
def classification_model_forward(x, prep, n_labels):
    B, F = x.shape
    H1p = prep["w1"].shape[1]
    H2p = prep["w2"].shape[1]
    Lp = prep["w3"].shape[1]

    # Batch tile: big enough to amortize per-grid-step overhead and weight
    # pushes (measured roofline ~85% at 512-row tiles), but split so large B
    # gives >= 2 tiles for v7x megacore sharding.
    block_b = max(8, min(512, _round_up(-(-B // 2), 8)))
    B_pad = _round_up(B, block_b)
    n_tiles = B_pad // block_b

    x_p = x if B_pad == B else jnp.pad(x, ((0, B_pad - B), (0, 0)))

    # Weights / scale / shift rows: VMEM-resident (constant block index).
    # TODO(synk): at large hidden dims, mark these pipeline_mode=pl.Buffered(1)
    # (or DMA once into scratch) to avoid double-buffered copies of constants.
    resident = lambda a: pl.BlockSpec(a.shape, lambda i: (0, 0))

    flops = 2 * B_pad * (F * H1p + H1p * H2p + H2p * Lp)
    bytes_accessed = (B_pad * F * x.dtype.itemsize               # x (f32 in)
                      + (F * H1p + H1p * H2p + H2p * Lp) * 2     # bf16 weights
                      + (2 * H1p + 2 * H2p + Lp) * 4             # f32 scale/shift
                      + B_pad * Lp * 2)                          # bf16 logits out

    out = pl.pallas_call(
        mlp_kernel,
        out_shape=jax.ShapeDtypeStruct((B_pad, Lp), jnp.bfloat16),
        grid=(n_tiles,),
        in_specs=[
            pl.BlockSpec((block_b, F), lambda i: (i, 0)),   # x: unpadded feature dim
            resident(prep["w1"]), resident(prep["s1"]), resident(prep["t1"]),
            resident(prep["w2"]), resident(prep["s2"]), resident(prep["t2"]),
            resident(prep["w3"]), resident(prep["b3"]),
        ],
        out_specs=pl.BlockSpec((block_b, Lp), lambda i: (i, 0)),
        compiler_params=pltpu.CompilerParams(
            dimension_semantics=("parallel",)),
        cost_estimate=pl.CostEstimate(flops=flops, transcendentals=0,
                                      bytes_accessed=bytes_accessed),
    )(x_p, prep["w1"], prep["s1"], prep["t1"], prep["w2"], prep["s2"],
      prep["t2"], prep["w3"], prep["b3"])

    # Under jit this tiny slice/cast fuses with the kernel's output copy.
    return out[:B, :n_labels].astype(jnp.float32)


# ----------------------------------------------------------------------------
# Params / reference
# ----------------------------------------------------------------------------
def init_params(key, n_features, n_hidden1, n_hidden2, n_labels):
    ks = jax.random.split(key, 12)

    def lin(k, fan_in, fan_out):
        bound = 1.0 / np.sqrt(fan_in)
        kw, kb = jax.random.split(k)
        w = jax.random.uniform(kw, (fan_in, fan_out), jnp.float32, -bound, bound)
        b = jax.random.uniform(kb, (fan_out,), jnp.float32, -bound, bound)
        return w, b

    w1, b1 = lin(ks[0], n_features, n_hidden1)
    w2, b2 = lin(ks[1], n_hidden1, n_hidden2)
    w3, b3 = lin(ks[2], n_hidden2, n_labels)

    g1 = 1.0 + 0.1 * jax.random.normal(ks[3], (n_hidden1,), jnp.float32)
    beta1 = 0.05 * jax.random.normal(ks[4], (n_hidden1,), jnp.float32)
    rm1 = 0.1 * jax.random.normal(ks[5], (n_hidden1,), jnp.float32)
    rv1 = 1.0 + 0.1 * jnp.abs(jax.random.normal(ks[6], (n_hidden1,), jnp.float32))

    g2 = 1.0 + 0.1 * jax.random.normal(ks[7], (n_hidden2,), jnp.float32)
    beta2 = 0.05 * jax.random.normal(ks[8], (n_hidden2,), jnp.float32)
    rm2 = 0.1 * jax.random.normal(ks[9], (n_hidden2,), jnp.float32)
    rv2 = 1.0 + 0.1 * jnp.abs(jax.random.normal(ks[10], (n_hidden2,), jnp.float32))

    return dict(w1=w1, b1=b1, g1=g1, beta1=beta1, rm1=rm1, rv1=rv1,
                w2=w2, b2=b2, g2=g2, beta2=beta2, rm2=rm2, rv2=rv2,
                w3=w3, b3=b3)


def reference_forward(x, p, eps=1e-5):
    h = x @ p["w1"] + p["b1"]
    h = (h - p["rm1"]) / jnp.sqrt(p["rv1"] + eps) * p["g1"] + p["beta1"]
    h = jnp.maximum(h, 0.0)
    h = h @ p["w2"] + p["b2"]
    h = (h - p["rm2"]) / jnp.sqrt(p["rv2"] + eps) * p["g2"] + p["beta2"]
    h = jnp.maximum(h, 0.0)
    return h @ p["w3"] + p["b3"]


# ----------------------------------------------------------------------------
if __name__ == "__main__":
    key = jax.random.PRNGKey(0)
    kx, kp = jax.random.split(key)

    n_features, n_hidden1, n_hidden2, n_labels = 16, 32, 16, 4
    params = init_params(kp, n_features, n_hidden1, n_hidden2, n_labels)

    # One-time constant prep (BN fold / pad / bf16 cast), outside the hot path.
    prep, n_labels_out = prepare_params(params)
    fwd = jax.jit(functools.partial(classification_model_forward,
                                    n_labels=n_labels_out))

    # B=8: single tile.  B=200: two tiles + row padding (multi-tile path).
    for B in (8, 200):
        x = jax.random.normal(jax.random.fold_in(kx, B), (B, n_features),
                              jnp.float32)
        out = jax.block_until_ready(fwd(x, prep))
        assert out.shape == (B, n_labels)

        ref = reference_forward(x, params)
        # bf16 MXU inputs / bf16 logits store with f32 accumulation ->
        # loosened tolerance vs pure-f32 reference.
        np.testing.assert_allclose(np.asarray(out), np.asarray(ref),
                                   rtol=6e-2, atol=6e-2)

    print("KERNEL_OK")
</pallas_src>

<mosaic_0001>
module attributes {stable_mosaic.version = 11 : i64} {
  func.func @mlp_kernel(%arg0: i32, %arg1: memref<8x16xf32, #tpu.memory_space<vmem>>, %arg2: memref<16x128xbf16, #tpu.memory_space<vmem>>, %arg3: memref<1x128xf32, #tpu.memory_space<vmem>>, %arg4: memref<1x128xf32, #tpu.memory_space<vmem>>, %arg5: memref<128x128xbf16, #tpu.memory_space<vmem>>, %arg6: memref<1x128xf32, #tpu.memory_space<vmem>>, %arg7: memref<1x128xf32, #tpu.memory_space<vmem>>, %arg8: memref<128x128xbf16, #tpu.memory_space<vmem>>, %arg9: memref<1x128xf32, #tpu.memory_space<vmem>>, %arg10: memref<8x128xbf16, #tpu.memory_space<vmem>>) attributes {dimension_semantics = [#tpu.dimension_semantics<parallel>], iteration_bounds = array<i64: 1>, scalar_prefetch = 0 : i64, scratch_operands = 0 : i64, tpu.core_type = #tpu.core_type<tc>, window_params = [{transform_indices = @transform_0, window_bounds = array<i64: 8, 16>}, {pipeline_mode = #tpu.pipeline_mode<synchronous>, transform_indices = @transform_1, window_bounds = array<i64: 16, 128>}, {pipeline_mode = #tpu.pipeline_mode<synchronous>, transform_indices = @transform_2, window_bounds = array<i64: 1, 128>}, {pipeline_mode = #tpu.pipeline_mode<synchronous>, transform_indices = @transform_3, window_bounds = array<i64: 1, 128>}, {pipeline_mode = #tpu.pipeline_mode<synchronous>, transform_indices = @transform_4, window_bounds = array<i64: 128, 128>}, {pipeline_mode = #tpu.pipeline_mode<synchronous>, transform_indices = @transform_5, window_bounds = array<i64: 1, 128>}, {pipeline_mode = #tpu.pipeline_mode<synchronous>, transform_indices = @transform_6, window_bounds = array<i64: 1, 128>}, {pipeline_mode = #tpu.pipeline_mode<synchronous>, transform_indices = @transform_7, window_bounds = array<i64: 128, 128>}, {pipeline_mode = #tpu.pipeline_mode<synchronous>, transform_indices = @transform_8, window_bounds = array<i64: 1, 128>}, {transform_indices = @transform_9, window_bounds = array<i64: 8, 128>}]} {
    %c0 = arith.constant 0 : index
    %c0_0 = arith.constant 0 : index
    %0 = vector.load %arg1[%c0, %c0_0] : memref<8x16xf32, #tpu.memory_space<vmem>>, vector<8x16xf32>
    %1 = arith.truncf %0 : vector<8x16xf32> to vector<8x16xbf16>
    %c0_1 = arith.constant 0 : index
    %c0_2 = arith.constant 0 : index
    %2 = vector.load %arg2[%c0_1, %c0_2] : memref<16x128xbf16, #tpu.memory_space<vmem>>, vector<16x128xbf16>
    %cst = arith.constant dense<0.000000e+00> : vector<8x128xf32>
    %3 = tpu.matmul %1, %2, %cst {dimension_numbers = #tpu.dot_dimension_numbers<[1], [0], [0], [1], [0, 0, 1, 1], [], []>} : vector<8x16xbf16>, vector<16x128xbf16>, vector<8x128xf32> -> vector<8x128xf32>
    %c0_3 = arith.constant 0 : index
    %c0_4 = arith.constant 0 : index
    %4 = vector.load %arg3[%c0_3, %c0_4] : memref<1x128xf32, #tpu.memory_space<vmem>>, vector<1x128xf32>
    %5 = vector.broadcast %4 : vector<1x128xf32> to vector<8x128xf32>
    %6 = arith.mulf %3, %5 : vector<8x128xf32>
    %c0_5 = arith.constant 0 : index
    %c0_6 = arith.constant 0 : index
    %7 = vector.load %arg4[%c0_5, %c0_6] : memref<1x128xf32, #tpu.memory_space<vmem>>, vector<1x128xf32>
    %8 = vector.broadcast %7 : vector<1x128xf32> to vector<8x128xf32>
    %9 = arith.addf %6, %8 : vector<8x128xf32>
    %cst_7 = arith.constant 0.000000e+00 : f32
    %10 = vector.broadcast %cst_7 : f32 to vector<8x128xf32>
    %11 = arith.maximumf %9, %10 : vector<8x128xf32>
    %12 = arith.truncf %11 : vector<8x128xf32> to vector<8x128xbf16>
    %c0_8 = arith.constant 0 : index
    %c0_9 = arith.constant 0 : index
    %13 = vector.load %arg5[%c0_8, %c0_9] : memref<128x128xbf16, #tpu.memory_space<vmem>>, vector<128x128xbf16>
    %cst_10 = arith.constant dense<0.000000e+00> : vector<8x128xf32>
    %14 = tpu.matmul %12, %13, %cst_10 {dimension_numbers = #tpu.dot_dimension_numbers<[1], [0], [0], [1], [0, 0, 1, 1], [], []>} : vector<8x128xbf16>, vector<128x128xbf16>, vector<8x128xf32> -> vector<8x128xf32>
    %c0_11 = arith.constant 0 : index
    %c0_12 = arith.constant 0 : index
    %15 = vector.load %arg6[%c0_11, %c0_12] : memref<1x128xf32, #tpu.memory_space<vmem>>, vector<1x128xf32>
    %16 = vector.broadcast %15 : vector<1x128xf32> to vector<8x128xf32>
    %17 = arith.mulf %14, %16 : vector<8x128xf32>
    %c0_13 = arith.constant 0 : index
    %c0_14 = arith.constant 0 : index
    %18 = vector.load %arg7[%c0_13, %c0_14] : memref<1x128xf32, #tpu.memory_space<vmem>>, vector<1x128xf32>
    %19 = vector.broadcast %18 : vector<1x128xf32> to vector<8x128xf32>
    %20 = arith.addf %17, %19 : vector<8x128xf32>
    %cst_15 = arith.constant 0.000000e+00 : f32
    %21 = vector.broadcast %cst_15 : f32 to vector<8x128xf32>
    %22 = arith.maximumf %20, %21 : vector<8x128xf32>
    %23 = arith.truncf %22 : vector<8x128xf32> to vector<8x128xbf16>
    %c0_16 = arith.constant 0 : index
    %c0_17 = arith.constant 0 : index
    %24 = vector.load %arg8[%c0_16, %c0_17] : memref<128x128xbf16, #tpu.memory_space<vmem>>, vector<128x128xbf16>
    %cst_18 = arith.constant dense<0.000000e+00> : vector<8x128xf32>
    %25 = tpu.matmul %23, %24, %cst_18 {dimension_numbers = #tpu.dot_dimension_numbers<[1], [0], [0], [1], [0, 0, 1, 1], [], []>} : vector<8x128xbf16>, vector<128x128xbf16>, vector<8x128xf32> -> vector<8x128xf32>
    %c0_19 = arith.constant 0 : index
    %c0_20 = arith.constant 0 : index
    %26 = vector.load %arg9[%c0_19, %c0_20] : memref<1x128xf32, #tpu.memory_space<vmem>>, vector<1x128xf32>
    %27 = vector.broadcast %26 : vector<1x128xf32> to vector<8x128xf32>
    %28 = arith.addf %25, %27 : vector<8x128xf32>
    %29 = arith.truncf %28 : vector<8x128xf32> to vector<8x128xbf16>
    %c0_21 = arith.constant 0 : index
    %c0_22 = arith.constant 0 : index
    %30 = vector.load %arg10[%c0_21, %c0_22] : memref<8x128xbf16, #tpu.memory_space<vmem>>, vector<8x128xbf16>
    tpu.vector_store %arg10[%c0_21, %c0_22], %29 {strides = array<i32>} : memref<8x128xbf16, #tpu.memory_space<vmem>>, vector<8x128xbf16>,
    return
  }
  func.func @transform_0(%arg0: i32) -> (i32, i32) {
    %c0_i32 = arith.constant 0 : i32
    %c0_i32_0 = arith.constant 0 : i32
    return %arg0, %c0_i32 : i32, i32
  }
  func.func @transform_1(%arg0: i32) -> (i32, i32) {
    %c0_i32 = arith.constant 0 : i32
    %c0_i32_0 = arith.constant 0 : i32
    %c0_i32_1 = arith.constant 0 : i32
    return %c0_i32, %c0_i32_0 : i32, i32
  }
  func.func @transform_2(%arg0: i32) -> (i32, i32) {
    %c0_i32 = arith.constant 0 : i32
    %c0_i32_0 = arith.constant 0 : i32
    %c0_i32_1 = arith.constant 0 : i32
    return %c0_i32, %c0_i32_0 : i32, i32
  }
  func.func @transform_3(%arg0: i32) -> (i32, i32) {
    %c0_i32 = arith.constant 0 : i32
    %c0_i32_0 = arith.constant 0 : i32
    %c0_i32_1 = arith.constant 0 : i32
    return %c0_i32, %c0_i32_0 : i32, i32
  }
  func.func @transform_4(%arg0: i32) -> (i32, i32) {
    %c0_i32 = arith.constant 0 : i32
    %c0_i32_0 = arith.constant 0 : i32
    %c0_i32_1 = arith.constant 0 : i32
    return %c0_i32, %c0_i32_0 : i32, i32
  }
  func.func @transform_5(%arg0: i32) -> (i32, i32) {
    %c0_i32 = arith.constant 0 : i32
    %c0_i32_0 = arith.constant 0 : i32
    %c0_i32_1 = arith.constant 0 : i32
    return %c0_i32, %c0_i32_0 : i32, i32
  }
  func.func @transform_6(%arg0: i32) -> (i32, i32) {
    %c0_i32 = arith.constant 0 : i32
    %c0_i32_0 = arith.constant 0 : i32
    %c0_i32_1 = arith.constant 0 : i32
    return %c0_i32, %c0_i32_0 : i32, i32
  }
  func.func @transform_7(%arg0: i32) -> (i32, i32) {
    %c0_i32 = arith.constant 0 : i32
    %c0_i32_0 = arith.constant 0 : i32
    %c0_i32_1 = arith.constant 0 : i32
    return %c0_i32, %c0_i32_0 : i32, i32
  }
  func.func @transform_8(%arg0: i32) -> (i32, i32) {
    %c0_i32 = arith.constant 0 : i32
    %c0_i32_0 = arith.constant 0 : i32
    %c0_i32_1 = arith.constant 0 : i32
    return %c0_i32, %c0_i32_0 : i32, i32
  }
  func.func @transform_9(%arg0: i32) -> (i32, i32) {
    %c0_i32 = arith.constant 0 : i32
    %c0_i32_0 = arith.constant 0 : i32
    return %arg0, %c0_i32 : i32, i32
  }
}

</mosaic_0001>

<bundles_post_ra>
// kernel: classification_model_forward.1
= control target key start
LH: loop header
LB: loop body
LE: loop exit
PB: predicated region body
PF: predicated region fallthrough
CT: control target
= control target key end

     0   :  { %14 = vsyncpa [#allocation3], 0  ;;  %s756_s0 = inlined_call_operand.hbm [shape: f32[8,16], index: 0, kind: input, shape index: {}]   ;;  %s757_s1 = inlined_call_operand.vmem [shape: bf16[16,128], index: 1, kind: input, shape index: {}]   ;;  %s758_s2 = inlined_call_operand.vmem [shape: f32[1,128], index: 2, kind: input, shape index: {}]   ;;  %s759_s3 = inlined_call_operand.vmem [shape: f32[1,128], index: 3, kind: input, shape index: {}]   ;;  %s760_s4 = inlined_call_operand.hbm [shape: bf16[128,128], index: 4, kind: input, shape index: {}]   ;;  %s761_s5 = inlined_call_operand.vmem [shape: f32[1,128], index: 5, kind: input, shape index: {}]   ;;  %s762_s6 = inlined_call_operand.vmem [shape: f32[1,128], index: 6, kind: input, shape index: {}]   ;;  %s763_s7 = inlined_call_operand.hbm [shape: bf16[128,128], index: 7, kind: input, shape index: {}]   ;;  %s764_s8 = inlined_call_operand.hbm [shape: f32[1,128], index: 8, kind: input, shape index: {}]   ;;  %s765_s9 = inlined_call_operand.vmem [shape: bf16[8,128], index: 9, kind: output, shape index: {}]  }
   0x1   :  { %15 = vsyncpa [#allocation5], 0 }
   0x2   :  { %16 = vsyncpa [#allocation8], 0  ;;  %s606_s30 = smov [#allocation4]   ;;  %s512_s13 = scalar_lea.hbm %s760_s4, 1024 }
   0x3   :  { %s38_s10 = sshll.u32 %s606_s30, 4  ;;  %p513_p0 = scmp.ne.s32.totalorder %s760_s4, %s512_s13  ;;  %s39_s10 = int_to_ptr.vmem [resolvable:$true] %s38_s10 }
   0x4   :  { %p516_p1 = scmp.lt.u32.totalorder %s512_s13, %s760_s4 }
   0x6   :  { %p518_p2 = pnand %p516_p1, %p513_p0 }
   0x8   :  { %521 = shalt.err (!%p518_p2)
}
   0x9   :  { %s522_s18 = scalar_lea.vmem %s39_s10, 1024  ;;  %p527_p4 = scmp.lt.s32.totalorder %s39_s10, %s39_s10 }
   0xa   :  { %p523_p3 = scmp.ne.s32.totalorder %s39_s10, %s522_s18  ;;  %p528_p5 = scmp.lt.s32.totalorder %s522_s18, %s522_s18 }
   0xc   :  { %p529_p6 = por %p528_p5, %p527_p4 }
   0xe   :  { %p530_p7 = pnand %p529_p6, %p523_p3 }
  0x10   :  { %533 = shalt.err (!%p530_p7)
}
  0x11   :  { %s607_s19 = smov 64   ;;  %s608_s20 = smov 4  }
  0x12   :  { %44 = dma.hbm_to_vmem [thread:$0]  %s760_s4, 1024, %s39_s10, [#allocation5], %s607_s19, %s607_s19, %s608_s20  }
  0x13   :  { %s609_s23 = smov [#allocation2]   ;;  %s610_s25 = smov [#allocation6]  }
  0x14   :  { %s23_s24 = sshll.u32 %s609_s23, 4  ;;  %s54_s26 = sshll.u32 %s610_s25, 4  ;;  %s24_s24 = int_to_ptr.vmem [resolvable:$true] %s23_s24  ;;  %s55_s26 = int_to_ptr.vmem [resolvable:$true] %s54_s26 }
  0x15   :  { %s534_s29 = scalar_lea.hbm %s756_s0, 128 }
  0x16   :  { %p535_p8 = scmp.ne.s32.totalorder %s756_s0, %s534_s29  ;;  %p538_p9 = scmp.lt.u32.totalorder %s534_s29, %s756_s0 }
  0x18   :  { %p540_p10 = pnand %p538_p9, %p535_p8 }
  0x1a   :  { %543 = shalt.err (!%p540_p10)
}
  0x1b   :  { %s544_s4 = scalar_lea.vmem %s24_s24, 128  ;;  %p549_p12 = scmp.lt.s32.totalorder %s24_s24, %s24_s24 }
  0x1c   :  { %p545_p11 = scmp.ne.s32.totalorder %s24_s24, %s544_s4  ;;  %p550_p13 = scmp.lt.s32.totalorder %s544_s4, %s544_s4 }
  0x1e   :  { %p551_p0 = por %p550_p13, %p549_p12 }
  0x20   :  { %p552_p1 = pnand %p551_p0, %p545_p11 }
  0x22   :  { %555 = shalt.err (!%p552_p1)
}
  0x23   :  { %26 = dma.hbm_to_vmem [thread:$0]  %s756_s0, 128, %s24_s24, [#allocation3]  }
  0x24   :  { %s556_s17 = scalar_lea.hbm %s763_s7, 1024 }
  0x25   :  { %p557_p2 = scmp.ne.s32.totalorder %s763_s7, %s556_s17  ;;  %p560_p3 = scmp.lt.u32.totalorder %s556_s17, %s763_s7 }
  0x27   :  { %p562_p4 = pnand %p560_p3, %p557_p2 }
  0x29   :  { %565 = shalt.err (!%p562_p4)
}
  0x2a   :  { %s566_s25 = scalar_lea.vmem %s55_s26, 1024  ;;  %p571_p6 = scmp.lt.s32.totalorder %s55_s26, %s55_s26 }
  0x2b   :  { %p567_p5 = scmp.ne.s32.totalorder %s55_s26, %s566_s25  ;;  %p572_p7 = scmp.lt.s32.totalorder %s566_s25, %s566_s25 }
  0x2d   :  { %p573_p8 = por %p572_p7, %p571_p6 }
  0x2f   :  { %p574_p9 = pnand %p573_p8, %p567_p5 }
  0x31   :  { %577 = shalt.err (!%p574_p9)
}
  0x32   :  { %60 = dma.hbm_to_vmem [thread:$0]  %s763_s7, 1024, %s55_s26, [#allocation5], %s607_s19, %s607_s19, %s608_s20  }
  0x33   :  { %s611_s27 = smov [#allocation7]   ;;  %s578_s11 = scalar_lea.hbm %s764_s8, 16 }
  0x34   :  { %s67_s28 = sshll.u32 %s611_s27, 4  ;;  %p579_p10 = scmp.ne.s32.totalorder %s764_s8, %s578_s11  ;;  %s68_s28 = int_to_ptr.vmem [resolvable:$true] %s67_s28 }
  0x35   :  { %p582_p11 = scmp.lt.u32.totalorder %s578_s11, %s764_s8 }
  0x37   :  { %p584_p12 = pnand %p582_p11, %p579_p10 }
  0x39   :  { %587 = shalt.err (!%p584_p12)
}
  0x3a   :  { %s588_s14 = scalar_lea.vmem %s68_s28, 16  ;;  %s592_s7 = scalar_lea.vmem %s68_s28, 32 }
  0x3b   :  { %p589_p13 = scmp.ne.s32.totalorder %s68_s28, %s588_s14  ;;  %p593_p0 = scmp.lt.s32.totalorder %s68_s28, %s68_s28 }
  0x3c   :  { %p594_p1 = scmp.lt.s32.totalorder %s592_s7, %s588_s14 }
  0x3e   :  { %p595_p2 = por %p594_p1, %p593_p0 }
  0x40   :  { %p596_p3 = pnand %p595_p2, %p589_p13 }
  0x42   :  { %599 = shalt.err (!%p596_p3)
}
  0x43   :  { %70 = dma.hbm_to_vmem [thread:$0]  %s764_s8, 16, %s68_s28, [#allocation8]  }
  0x44   :  { %600 = dma.done.wait [#allocation3], 128  }
  0x45   :  { %601 = vsyncadd [#allocation3], 4294967168 }
  0x46   :  { %602 = dma.done.wait [#allocation5], 2048  }
  0x47   :  { %603 = vsyncadd [#allocation5], 4294965248 }
  0x48   :  { %604 = dma.done.wait [#allocation8], 16  }
  0x49   :  { %605 = vsyncadd [#allocation8], 4294967280  ;;  %v612_v0 = vmov 0.0   ;;  %vm613_vm0 = vmmov 0   ;;  %v495_v1 = vld [vmem:[%s757_s1] sm:$0xff]   ;;  %vm94_vm1 = vcmask 130048  }
  0x4a   :  { %441 = vmatprep.subr.bf16.mxu0 %v612_v0  ;;  %443 = vmatprep.mubr.msk.bf16.mxu0 %vm613_vm0, %v612_v0  ;;  %v84_v2 = vld [vmem:[#allocation2] sm:$0xff]  ;;  %v496_v4 = vld [vmem:[#allocation4] sm:$0xff]   ;;  %v497_v5 = vld [vmem:[#allocation4 + $0x8] sm:$0xff]  }
  0x4b   :  { %447 = vmatprep.subr.bf16.mxu1 %v612_v0  ;;  %463 = vmatprep.mubr.msk.bf16.mxu1 %vm613_vm0, %v612_v0  ;;  %v85_v3 = vpack.c.bf16 %v84_v2, %v84_v2  ;;  %v498_v6 = vld [vmem:[#allocation4 + $0x10] sm:$0xff]   ;;  %v499_v7 = vld [vmem:[#allocation4 + $0x18] sm:$0xff]   ;;  %v500_v8 = vld [vmem:[#allocation4 + $0x20] sm:$0xff]  }
  0x4c   :  { %442 = vmatpush3.bf16.msra.mxu0 %v495_v1  ;;  %448 = vmatpush3.bf16.msra.mxu1 %v496_v4  ;;  %v501_v9 = vld [vmem:[#allocation4 + $0x28] sm:$0xff]   ;;  %v502_v10 = vld [vmem:[#allocation4 + $0x30] sm:$0xff]   ;;  %v503_v11 = vld [vmem:[#allocation4 + $0x38] sm:$0xff]  }
  0x4d   :  { %467 = vmatprep.subr.bf16.mxu0 %v612_v0  ;;  %449 = vmatprep.subr.bf16.mxu1 %v612_v0  ;;  %v504_v12 = vld [vmem:[#allocation6] sm:$0xff]   ;;  %v505_v13 = vld [vmem:[#allocation6 + $0x8] sm:$0xff]   ;;  %v506_v14 = vld [vmem:[#allocation6 + $0x10] sm:$0xff]  }
  0x4e   :  { %v507_v15 = vld [vmem:[#allocation6 + $0x18] sm:$0xff]   ;;  %v508_v16 = vld [vmem:[#allocation6 + $0x20] sm:$0xff]   ;;  %v509_v17 = vld [vmem:[#allocation6 + $0x28] sm:$0xff]  }
  0x4f   :  { %444 = vmatmul.mubr.msk.bf16.vlgmr.msra.gmra.mrb[0].mxu0 %vm94_vm1, %v85_v3  ;;  %v400_v18 = vld [vmem:[%s758_s2] ss:$0 sm:$0xff]  ;;  %v510_v28 = vld [vmem:[#allocation6 + $0x30] sm:$0xff]   ;;  %v412_v40 = vld [vmem:[#allocation7] ss:$0 sm:$0xff] }
  0x50   :  { %483 = vmatprep.mubr.msk.bf16.mxu0 %vm613_vm0, %v612_v0  ;;  %450 = vmatpush3.bf16.msra.mxu1 %v497_v5  ;;  %v401_v20 = vld [vmem:[%s759_s3] ss:$0 sm:$0xff] }
  0x51   :  { %451 = vmatprep.subr.bf16.mxu1 %v612_v0  ;;  %468 = vmatpush3.bf16.msra.mxu0 %v504_v12  ;;  %v511_v29 = vld [vmem:[#allocation6 + $0x38] sm:$0xff]  }
  0x52   :  { %469 = vmatprep.subr.bf16.mxu0 %v612_v0  ;;  %v410_v30 = vld [vmem:[%s761_s5] ss:$0 sm:$0xff] }
  0x53   :  { %v411_v32 = vld [vmem:[%s762_s6] ss:$0 sm:$0xff] }
  0x54   :  { %452 = vmatpush3.bf16.msra.mxu1 %v498_v6 }
  0x55   :  { %453 = vmatprep.subr.bf16.mxu1 %v612_v0  ;;  %470 = vmatpush3.bf16.msra.mxu0 %v505_v13 }
  0x56   :  { %471 = vmatprep.subr.bf16.mxu0 %v612_v0 }
  0x58   :  { %454 = vmatpush3.bf16.msra.mxu1 %v499_v7 }
  0x59   :  { %455 = vmatprep.subr.bf16.mxu1 %v612_v0  ;;  %472 = vmatpush3.bf16.msra.mxu0 %v506_v14 }
  0x5a   :  { %473 = vmatprep.subr.bf16.mxu0 %v612_v0 }
  0x5c   :  { %456 = vmatpush3.bf16.msra.mxu1 %v500_v8 }
  0x5d   :  { %457 = vmatprep.subr.bf16.mxu1 %v612_v0  ;;  %474 = vmatpush3.bf16.msra.mxu0 %v507_v15 }
  0x5e   :  { %475 = vmatprep.subr.bf16.mxu0 %v612_v0 }
  0x60   :  { %458 = vmatpush3.bf16.msra.mxu1 %v501_v9 }
  0x61   :  { %459 = vmatprep.subr.bf16.mxu1 %v612_v0  ;;  %476 = vmatpush3.bf16.msra.mxu0 %v508_v16 }
  0x62   :  { %477 = vmatprep.subr.bf16.mxu0 %v612_v0 }
  0x64   :  { %460 = vmatpush3.bf16.msra.mxu1 %v502_v10 }
  0x65   :  { %461 = vmatprep.subr.bf16.mxu1 %v612_v0  ;;  %478 = vmatpush3.bf16.msra.mxu0 %v509_v17 }
  0x66   :  { %479 = vmatprep.subr.bf16.mxu0 %v612_v0 }
  0x68   :  { %462 = vmatpush3.bf16.msra.mxu1 %v503_v11 }
  0x69   :  { %480 = vmatpush3.bf16.msra.mxu0 %v510_v28 }
  0x6a   :  { %481 = vmatprep.subr.bf16.mxu0 %v612_v0 }
  0x6d   :  { %482 = vmatpush3.bf16.msra.mxu0 %v511_v29 }
 0x122   :  { %v132_v19 = vpop.f32.mrb[0].mxu0 }
 0x123   :  { %v145_v21 = vmul.f32 %v400_v18, %v132_v19  ;;  %v445_v22 = vpop.f32.mrb[1].mxu0 }
 0x124   :  { %v135_v23 = vpop.f32.mrb[2].mxu0 }
 0x125   :  { %v153_v24 = vadd.f32 %v401_v20, %v145_v21  ;;  %v446_v25 = vpop.f32.mrb[3].mxu0 }
 0x127   :  { %v154_v26 = vmax.f32 %v153_v24, 0.0 }
 0x129   :  { %v155_v27 = vpack.c.bf16 %v154_v26, %v154_v26 }
 0x12b   :  { %464 = vmatmul.mubr.bf16.vlgmr.msra.gmra.mrb[0].mxu1 %v155_v27 }
 0x1fe   :  { %v254_v31 = vpop.f32.mrb[0].mxu1 }
 0x1ff   :  { %v267_v33 = vmul.f32 %v410_v30, %v254_v31  ;;  %v465_v34 = vpop.f32.mrb[1].mxu1 }
 0x200   :  { %v257_v35 = vpop.f32.mrb[2].mxu1 }
 0x201   :  { %v275_v36 = vadd.f32 %v411_v32, %v267_v33  ;;  %v466_v37 = vpop.f32.mrb[3].mxu1 }
 0x203   :  { %v276_v38 = vmax.f32 %v275_v36, 0.0 }
 0x205   :  { %v277_v39 = vpack.c.bf16 %v276_v38, %v276_v38 }
 0x207   :  { %484 = vmatmul.mubr.bf16.vlgmr.msra.gmra.mrb[4].mxu0 %v277_v39 }
 0x2da   :  { %v383_v41 = vpop.f32.mrb[4].mxu0 }
 0x2db   :  { %v384_v42 = vadd.f32 %v412_v40, %v383_v41  ;;  %v485_v43 = vpop.f32.mrb[5].mxu0 }
 0x2dc   :  { %v386_v44 = vpop.f32.mrb[6].mxu0 }
 0x2dd   :  { %v389_v45 = vpack.c.bf16 %v384_v42, %v384_v42  ;;  %v486_v46 = vpop.f32.mrb[7].mxu0 }
 0x2df   :  { %390 = vst [vmem:[%s765_s9] sm:$0xf] %v389_v45 }
 0x2e0   :  { %395 = vsyncpa [#allocation3], 1 }
 0x2e1   :  { %396 = vsyncpa [#allocation5], 1 }
 0x2e2   :  { %397 = vsyncpa [#allocation8], 1 }

</bundles_post_ra>
